<compile_context>
chip_gen: v5e
topology: v5e:2x2
jax: 0.10.0
libtpu: 0.0.40
codegen_flags: <defaults>
</compile_context>

<pallas_src>
import functools

import jax
import jax.numpy as jnp
from jax.experimental import pallas as pl
from jax.experimental.pallas import tpu as pltpu


# ---------------------------------------------------------------------------
# Kernels
# ---------------------------------------------------------------------------

def _se3d_fused_kernel(x_ref, w1_ref, w2_ref, out_ref, *, inv_s):
    """Whole-tensor-in-VMEM path: pool + MLP + sigmoid + multiply, one body."""
    x = x_ref[...].astype(jnp.float32)                            # (B, C, S)
    pooled = jnp.sum(x, axis=-1) * inv_s                          # (B, C) mean
    h = jnp.maximum(
        jnp.dot(pooled, w1_ref[...], preferred_element_type=jnp.float32), 0.0)
    scale = jax.nn.sigmoid(
        jnp.dot(h, w2_ref[...], preferred_element_type=jnp.float32))  # (B, C)
    out_ref[...] = (x * scale[:, :, None]).astype(out_ref.dtype)


def _pool_scale_kernel(x_ref, w1_ref, w2_ref, scale_ref, sum_sc, *, inv_s):
    """Pass 1: accumulate spatial sums; run the SE MLP ONCE on the last tile."""
    @pl.when(pl.program_id(0) == 0)
    def _():
        sum_sc[...] = jnp.zeros_like(sum_sc)

    sum_sc[...] += jnp.sum(x_ref[...].astype(jnp.float32), axis=-1)

    @pl.when(pl.program_id(0) == pl.num_programs(0) - 1)
    def _():
        pooled = sum_sc[...] * inv_s                               # (B, C) mean
        h = jnp.maximum(
            jnp.dot(pooled, w1_ref[...], preferred_element_type=jnp.float32),
            0.0)
        scale_ref[...] = jax.nn.sigmoid(
            jnp.dot(h, w2_ref[...], preferred_element_type=jnp.float32))


def _scale_mul_kernel(scale_ref, x_ref, out_ref):
    """Pass 2: pure broadcast multiply — no MLP work in the hot per-tile loop."""
    out_ref[...] = (
        x_ref[...].astype(jnp.float32) * scale_ref[...]
    ).astype(out_ref.dtype)


# ---------------------------------------------------------------------------
# Tiling helpers
# ---------------------------------------------------------------------------

# Keep double-buffered (input + output) blocks under ~8 MiB so the kernel fits
# the default scoped VMEM on every generation (16 MiB v5e, 32 MiB v6e/v7x)
# without needing to raise vmem_limit_bytes.
_TILE_BUDGET_BYTES = 8 * 1024 * 1024


def _choose_tile(S, rows, itemsize):
    """Largest lane tile that divides S, is a multiple of 128 (or == S), and
    keeps double-buffered in+out blocks under the VMEM budget."""
    if S <= 128:
        return S
    max_lanes = _TILE_BUDGET_BYTES // (4 * rows * itemsize)   # 2x in + 2x out
    max_lanes = max(128, (max_lanes // 128) * 128)
    max_lanes = min(max_lanes, S)
    t = max_lanes
    while t >= 128:
        if S % t == 0:
            return t
        t -= 128
    # No 128-multiple divides S: fall back to one full-S block (always legal
    # because the block equals the full array dim).
    # TODO(synk): ragged last-tile masking for spatial volumes with no
    # 128-multiple divisor that also overflow the VMEM budget as a single block.
    return S


# ---------------------------------------------------------------------------
# Forward wrapper
# ---------------------------------------------------------------------------

def se3d_forward(x, w1, w2, *, force_tiled=False):
    """SE3d forward.

    x  : (B, C, D, H, W)
    w1 : fc1.weight.T, shape (C, C // reduction)
    w2 : fc2.weight.T, shape (C // reduction, C)
    """
    B, C, D, H, W = x.shape
    S = D * H * W
    x_flat = x.reshape(B, C, S)
    itemsize = x.dtype.itemsize
    inv_s = 1.0 / S
    c_hid = w1.shape[1]

    # ---- Fused single-call path (small feature maps) -----------------------
    # Reads x from HBM once (2x traffic total instead of 3x) and skips one
    # kernel-launch / pipeline ramp. Gated so it stays well under the default
    # scoped VMEM on all generations.
    if (B * C * S * 4) <= 2 * 1024 * 1024 and not force_tiled:
        out_flat = pl.pallas_call(
            functools.partial(_se3d_fused_kernel, inv_s=inv_s),
            out_shape=jax.ShapeDtypeStruct((B, C, S), x.dtype),
            grid=(1,),
            in_specs=[
                pl.BlockSpec((B, C, S), lambda i: (0, 0, 0)),
                pl.BlockSpec(w1.shape, lambda i: (0, 0)),
                pl.BlockSpec(w2.shape, lambda i: (0, 0)),
            ],
            out_specs=pl.BlockSpec((B, C, S), lambda i: (0, 0, 0)),
            compiler_params=pltpu.CompilerParams(
                dimension_semantics=("arbitrary",)),
            cost_estimate=pl.CostEstimate(
                flops=3 * B * C * S + 4 * B * C * c_hid,
                transcendentals=B * C,
                bytes_accessed=2 * x.nbytes + w1.nbytes + w2.nbytes),
        )(x_flat, w1, w2)
        return out_flat.reshape(B, C, D, H, W)

    # ---- Tiled two-pass path ------------------------------------------------
    tile_s = _choose_tile(S, B * C, itemsize)
    grid = (S // tile_s,)

    # Pass 1: global average pool (sum accumulated across spatial tiles) with
    # the SE MLP + sigmoid hoisted into the finalize step (runs exactly once).
    # TODO(synk): on v7x, split this reduction over the 2 TensorCores via a
    # (2, S // (2*tile_s)) grid with per-core partial sums.
    scale = pl.pallas_call(
        functools.partial(_pool_scale_kernel, inv_s=inv_s),
        out_shape=jax.ShapeDtypeStruct((B, C), jnp.float32),
        grid=grid,
        in_specs=[
            pl.BlockSpec((B, C, tile_s), lambda s: (0, 0, s)),
            pl.BlockSpec(w1.shape, lambda s: (0, 0)),
            pl.BlockSpec(w2.shape, lambda s: (0, 0)),
        ],
        out_specs=pl.BlockSpec((B, C), lambda s: (0, 0)),
        scratch_shapes=[pltpu.VMEM((B, C), jnp.float32)],
        compiler_params=pltpu.CompilerParams(
            dimension_semantics=("arbitrary",)),
        cost_estimate=pl.CostEstimate(
            flops=B * C * S + 4 * B * C * c_hid,
            transcendentals=B * C,
            bytes_accessed=x.nbytes + w1.nbytes + w2.nbytes + B * C * 4),
    )(x_flat, w1, w2)

    # Pass 2: pure broadcast multiply over lane-dense 2D (B*C, tile_s) tiles.
    # (Could add input_output_aliases={1: 0} to update x in place when the
    #  caller donates it.)
    x2d = x_flat.reshape(B * C, S)
    scale2d = scale.reshape(B * C, 1)
    out2d = pl.pallas_call(
        _scale_mul_kernel,
        out_shape=jax.ShapeDtypeStruct((B * C, S), x.dtype),
        grid=grid,
        in_specs=[
            pl.BlockSpec((B * C, 1), lambda s: (0, 0)),
            pl.BlockSpec((B * C, tile_s), lambda s: (0, s)),
        ],
        out_specs=pl.BlockSpec((B * C, tile_s), lambda s: (0, s)),
        compiler_params=pltpu.CompilerParams(
            dimension_semantics=("parallel",)),
        cost_estimate=pl.CostEstimate(
            flops=B * C * S,
            transcendentals=0,
            bytes_accessed=2 * x.nbytes + B * C * 4),
    )(scale2d, x2d)
    return out2d.reshape(B, C, D, H, W)


# ---------------------------------------------------------------------------
# Reference + test
# ---------------------------------------------------------------------------

def se3d_reference(x, w1, w2):
    pooled = x.astype(jnp.float32).mean(axis=(2, 3, 4))
    h = jnp.maximum(pooled @ w1, 0.0)
    scale = jax.nn.sigmoid(h @ w2)
    return (x.astype(jnp.float32) * scale[:, :, None, None, None]).astype(x.dtype)


if __name__ == "__main__":
    B, C, reduction = 2, 16, 8
    D = H = W = 8
    C_hid = C // reduction

    key = jax.random.PRNGKey(0)
    kx, k1, k2 = jax.random.split(key, 3)
    x = jax.random.normal(kx, (B, C, D, H, W), dtype=jnp.float32)

    # Deterministic init mimicking nn.Linear default: U(-1/sqrt(fan_in), ...).
    # fc1.weight has shape (C_hid, C); we store its transpose (C, C_hid) so the
    # kernel computes pooled @ W1.T directly. Likewise w2 = fc2.weight.T.
    b1 = 1.0 / (C ** 0.5)
    b2 = 1.0 / (C_hid ** 0.5)
    w1 = jax.random.uniform(k1, (C, C_hid), jnp.float32, -b1, b1)
    w2 = jax.random.uniform(k2, (C_hid, C), jnp.float32, -b2, b2)

    ref = se3d_reference(x, w1, w2)

    # Default (fused) path and the tiled two-pass path both validated.
    out_fused = jax.block_until_ready(se3d_forward(x, w1, w2))
    out_tiled = jax.block_until_ready(se3d_forward(x, w1, w2, force_tiled=True))

    for out in (out_fused, out_tiled):
        assert out.shape == x.shape and out.dtype == x.dtype
        assert jnp.allclose(out, ref, atol=1e-5, rtol=1e-5), "mismatch vs reference"
    print("KERNEL_OK")
</pallas_src>

<mosaic_0001>
module attributes {stable_mosaic.version = 11 : i64} {
  func.func @_se3d_fused_kernel(%arg0: i32, %arg1: memref<2x16x512xf32, #tpu.memory_space<vmem>>, %arg2: memref<16x2xf32, #tpu.memory_space<vmem>>, %arg3: memref<2x16xf32, #tpu.memory_space<vmem>>, %arg4: memref<2x16x512xf32, #tpu.memory_space<vmem>>) attributes {dimension_semantics = [#tpu.dimension_semantics<arbitrary>], iteration_bounds = array<i64: 1>, scalar_prefetch = 0 : i64, scratch_operands = 0 : i64, tpu.core_type = #tpu.core_type<tc>, window_params = [{pipeline_mode = #tpu.pipeline_mode<synchronous>, transform_indices = @transform_0, window_bounds = array<i64: 2, 16, 512>}, {pipeline_mode = #tpu.pipeline_mode<synchronous>, transform_indices = @transform_1, window_bounds = array<i64: 16, 2>}, {pipeline_mode = #tpu.pipeline_mode<synchronous>, transform_indices = @transform_2, window_bounds = array<i64: 2, 16>}, {pipeline_mode = #tpu.pipeline_mode<synchronous>, transform_indices = @transform_3, window_bounds = array<i64: 2, 16, 512>}]} {
    %c0 = arith.constant 0 : index
    %c0_0 = arith.constant 0 : index
    %c0_1 = arith.constant 0 : index
    %0 = vector.load %arg1[%c0, %c0_0, %c0_1] : memref<2x16x512xf32, #tpu.memory_space<vmem>>, vector<2x16x512xf32>
    %cst = arith.constant dense<0.000000e+00> : vector<2x16xf32>
    %1 = vector.multi_reduction <add>, %0, %cst [2] : vector<2x16x512xf32> to vector<2x16xf32>
    %cst_2 = arith.constant 0.001953125 : f32
    %2 = vector.broadcast %cst_2 : f32 to vector<2x16xf32>
    %3 = arith.mulf %1, %2 : vector<2x16xf32>
    %c0_3 = arith.constant 0 : index
    %c0_4 = arith.constant 0 : index
    %4 = vector.load %arg2[%c0_3, %c0_4] : memref<16x2xf32, #tpu.memory_space<vmem>>, vector<16x2xf32>
    %cst_5 = arith.constant dense<0.000000e+00> : vector<2x2xf32>
    %5 = tpu.matmul %3, %4, %cst_5 {dimension_numbers = #tpu.dot_dimension_numbers<[1], [0], [0], [1], [0, 0, 1, 1], [], []>} : vector<2x16xf32>, vector<16x2xf32>, vector<2x2xf32> -> vector<2x2xf32>
    %cst_6 = arith.constant 0.000000e+00 : f32
    %6 = vector.broadcast %cst_6 : f32 to vector<2x2xf32>
    %7 = arith.maximumf %5, %6 : vector<2x2xf32>
    %c0_7 = arith.constant 0 : index
    %c0_8 = arith.constant 0 : index
    %8 = vector.load %arg3[%c0_7, %c0_8] : memref<2x16xf32, #tpu.memory_space<vmem>>, vector<2x16xf32>
    %cst_9 = arith.constant dense<0.000000e+00> : vector<2x16xf32>
    %9 = tpu.matmul %7, %8, %cst_9 {dimension_numbers = #tpu.dot_dimension_numbers<[1], [0], [0], [1], [0, 0, 1, 1], [], []>} : vector<2x2xf32>, vector<2x16xf32>, vector<2x16xf32> -> vector<2x16xf32>
    %10 = arith.negf %9 : vector<2x16xf32>
    %11 = math.exp %10 : vector<2x16xf32>
    %cst_10 = arith.constant 1.000000e+00 : f32
    %12 = vector.broadcast %cst_10 : f32 to vector<2x16xf32>
    %13 = arith.addf %12, %11 : vector<2x16xf32>
    %14 = arith.divf %12, %13 : vector<2x16xf32>
    %15 = vector.shape_cast %14 : vector<2x16xf32> to vector<2x16x1xf32>
    %16 = vector.broadcast %15 : vector<2x16x1xf32> to vector<2x16x512xf32>
    %17 = arith.mulf %0, %16 : vector<2x16x512xf32>
    %c0_11 = arith.constant 0 : index
    %c0_12 = arith.constant 0 : index
    %c0_13 = arith.constant 0 : index
    %18 = vector.load %arg4[%c0_11, %c0_12, %c0_13] : memref<2x16x512xf32, #tpu.memory_space<vmem>>, vector<2x16x512xf32>
    tpu.vector_store %arg4[%c0_11, %c0_12, %c0_13], %17 {strides = array<i32>} : memref<2x16x512xf32, #tpu.memory_space<vmem>>, vector<2x16x512xf32>,
    return
  }
  func.func @transform_0(%arg0: i32) -> (i32, i32, i32) {
    %c0_i32 = arith.constant 0 : i32
    %c0_i32_0 = arith.constant 0 : i32
    %c0_i32_1 = arith.constant 0 : i32
    %c0_i32_2 = arith.constant 0 : i32
    return %c0_i32, %c0_i32_0, %c0_i32_1 : i32, i32, i32
  }
  func.func @transform_1(%arg0: i32) -> (i32, i32) {
    %c0_i32 = arith.constant 0 : i32
    %c0_i32_0 = arith.constant 0 : i32
    %c0_i32_1 = arith.constant 0 : i32
    return %c0_i32, %c0_i32_0 : i32, i32
  }
  func.func @transform_2(%arg0: i32) -> (i32, i32) {
    %c0_i32 = arith.constant 0 : i32
    %c0_i32_0 = arith.constant 0 : i32
    %c0_i32_1 = arith.constant 0 : i32
    return %c0_i32, %c0_i32_0 : i32, i32
  }
  func.func @transform_3(%arg0: i32) -> (i32, i32, i32) {
    %c0_i32 = arith.constant 0 : i32
    %c0_i32_0 = arith.constant 0 : i32
    %c0_i32_1 = arith.constant 0 : i32
    %c0_i32_2 = arith.constant 0 : i32
    return %c0_i32, %c0_i32_0, %c0_i32_1 : i32, i32, i32
  }
}

</mosaic_0001>

<bundles_post_ra>
// kernel: tpu_custom_call.1
= control target key start
LH: loop header
LB: loop body
LE: loop exit
PB: predicated region body
PF: predicated region fallthrough
CT: control target
= control target key end

     0   :  { %8 = vsyncpa [#allocation3], 0  ;;  %s416_s0 = inlined_call_operand.hbm [shape: f32[2,16,512], index: 0, kind: input, shape index: {}]   ;;  %s417_s1 = inlined_call_operand.vmem [shape: f32[16,2], index: 1, kind: input, shape index: {}]   ;;  %s418_s2 = inlined_call_operand.vmem [shape: f32[2,16], index: 2, kind: input, shape index: {}]   ;;  %s419_s3 = inlined_call_operand.hbm [shape: f32[2,16,512], index: 3, kind: output, shape index: {}]  }
   0x1   :  { %9 = vsyncpa [#allocation4], 0  ;;  %s14_s14 = sshll.u32 %s416_s0, 4  ;;  %s307_s15 = smov [#allocation2]   ;;  %s15_s14 = int_to_ptr.hbm [resolvable:$true] %s14_s14 }
   0x2   :  { %s16_s16 = sshll.u32 %s307_s15, 4  ;;  %s308_s17 = smov 512   ;;  %s17_s16 = int_to_ptr.vmem [resolvable:$true] %s16_s16 }
   0x3   :  { %s309_s18 = smov 32  }
   0x4   :  { %22 = dma.hbm_to_vmem [thread:$0]  %s15_s14, 2048, %s17_s16, [#allocation3], %s308_s17, %s308_s17, %s309_s18  }
   0x5   :  { %303 = dma.done.wait [#allocation3], 2048  }
   0x6   :  { %304 = vsyncadd [#allocation3], 4294965248  ;;  %v337_v0 = vld [vmem:[#allocation2 + $0x40] sm:$0xff]  ;;  %v339_v1 = vld [vmem:[#allocation2 + $0x48] sm:$0xff]  ;;  %v77_v31 = vlaneseq  ;;  %vm82_vm0 = vcmask 130112   ;;  %vm87_vm1 = vcmask 1041409  }
   0x7   :  { %v341_v2 = vld [vmem:[#allocation2 + $0x50] sm:$0xff]  ;;  %v57_v3 = vadd.f32 %v339_v1, %v337_v0  ;;  %v345_v4 = vld [vmem:[#allocation2] sm:$0xff]  ;;  %v347_v5 = vld [vmem:[#allocation2 + $0x8] sm:$0xff]  ;;  %vm89_vm2 = vcmask 130048   ;;  %vm118_vm3 = vcmask 1041408   ;;  %vm114_vm4 = vcmask 15360  }
   0x8   :  { %v349_v6 = vld [vmem:[#allocation2 + $0x58] sm:$0xff]  ;;  %v351_v7 = vld [vmem:[#allocation2 + $0x10] sm:$0xff]  ;;  %v47_v8 = vadd.f32 %v347_v5, %v345_v4  ;;  %v355_v9 = vld [vmem:[#allocation2 + $0x60] sm:$0xff]  ;;  %v78_v33 = vand.u32 127, %v77_v31  ;;  %v163_v51 = vshrl.u32 %v77_v31, 7  ;;  %s225_s26 = sshll.u32 %s419_s3, 4  ;;  %s226_s26 = int_to_ptr.hbm [resolvable:$true] %s225_s26 }
   0x9   :  { %v58_v10 = vadd.f32 %v57_v3, %v341_v2  ;;  %v358_v11 = vld [vmem:[#allocation2 + $0x18] sm:$0xff]  ;;  %v360_v12 = vld [vmem:[#allocation2 + $0x68] sm:$0xff]  ;;  %v363_v14 = vld [vmem:[#allocation2 + $0x70] sm:$0xff] }
   0xa   :  { %v48_v13 = vadd.f32 %v47_v8, %v351_v7  ;;  %v62_v15 = vadd.f32 %v360_v12, %v355_v9  ;;  %v367_v16 = vld [vmem:[#allocation2 + $0x20] sm:$0xff]  ;;  %v369_v17 = vld [vmem:[#allocation2 + $0x28] sm:$0xff]  ;;  %v372_v19 = vld [vmem:[#allocation2 + $0x30] sm:$0xff]  ;;  %v80_v35 = vadd.s32 4294967288, %v78_v33  ;;  %248 = vset.pattern.permute.xlu0 %v163_v51  ;;  %246 = vset.pattern.permute.xlu2 %v163_v51  ;;  %v170_v52 = vadd.s32 8, %v163_v51 }
   0xb   :  { %v59_v18 = vadd.f32 %v58_v10, %v349_v6  ;;  %v52_v20 = vadd.f32 %v369_v17, %v367_v16  ;;  %v378_v23 = vld [vmem:[#allocation2 + $0x78] sm:$0xff]  ;;  %v72_v28 = vld [vmem:[%s417_s1 + $0x8] sm:$0xff]  ;;  %v71_v29 = vld [vmem:[%s417_s1] sm:$0xff] }
   0xc   :  { %v49_v21 = vadd.f32 %v48_v13, %v358_v11  ;;  %v63_v22 = vadd.f32 %v62_v15, %v363_v14  ;;  %v381_v25 = vld [vmem:[#allocation2 + $0x38] sm:$0xff]  ;;  %106 = vmatpush.msra.mxu0 %v72_v28  ;;  %v113_v48 = vld [vmem:[%s418_s2] sm:$0x3]  ;;  %249 = vset.pattern.permute.xlu1 %v170_v52  ;;  %s310_s2 = smov [#allocation5]  }
   0xd   :  { %60 = vadd.xlane.f32.xlu1 %v59_v18  ;;  %v53_v24 = vadd.f32 %v52_v20, %v372_v19  ;;  %239 = vmatpush.msk.msra.mxu1 %vm118_vm3, %v113_v48  ;;  %s223_s23 = sshll.u32 %s310_s2, 4  ;;  %s224_s23 = int_to_ptr.vmem [resolvable:$true] %s223_s23 }
   0xe   :  { %50 = vadd.xlane.f32.xlu0 %v49_v21  ;;  %v64_v26 = vadd.f32 %v63_v22, %v378_v23  ;;  %107 = vmatpush.msra.mxu0 %v71_v29 }
   0xf   :  { %v54_v27 = vadd.f32 %v53_v24, %v381_v25 }
  0x15   :  { %65 = vadd.xlane.f32.xlu1 %v64_v26 }
  0x16   :  { %55 = vadd.xlane.f32.xlu0 %v54_v27 }
  0x80   :  { %v61_v30 = vpop.xlane.xlu1 %60 }
  0x81   :  { %v51_v32 = vpop.xlane.xlu0 %50  ;;  %v69_v34 = vmul.f32 0.001953125, %v61_v30 }
  0x82   :  { %v67_v36 = vmul.f32 0.001953125, %v51_v32 }
  0x83   :  { %v84_v41 = vperm.slane %v69_v34, %v78_v33 }
  0x84   :  { %v79_v43 = vperm.slane %v67_v36, %v78_v33 }
  0x88   :  { %v66_v37 = vpop.xlane.xlu1 %65 }
  0x89   :  { %v70_v38 = vmul.f32 0.001953125, %v66_v37  ;;  %v56_v39 = vpop.xlane.xlu0 %55 }
  0x8a   :  { %v68_v40 = vmul.f32 0.001953125, %v56_v39 }
  0x8b   :  { %v85_v42 = vperm.slane %v70_v38, %v80_v35 }
  0x8c   :  { %v81_v44 = vperm.slane %v68_v40, %v80_v35 }
  0x8d   :  { %v86_v45 = vsel %vm82_vm0, %v85_v42, %v84_v41 }
  0x8e   :  { %v83_v46 = vsel %vm82_vm0, %v81_v44, %v79_v43 }
  0x8f   :  { %v88_v47 = vsel %vm87_vm1, %v86_v45, %v83_v46 }
  0x90   :  { %238 = vmatmul.msk.f32.vlgmr.msra.gmra.mxu0 %vm89_vm2, %v88_v47 }
 0x10d   :  { %v109_v49 = vpop.f32.mrf.mxu0 }
 0x10e   :  { %v112_v50 = vmax.f32 %v109_v49, 0.0 }
 0x110   :  { %240 = vmatmul.msk.f32.vlgmr.msra.gmra.mxu1 %vm114_vm4, %v112_v50 }
 0x18d   :  { %v139_v53 = vpop.f32.mrf.mxu1 }
 0x18e   :  { %v241_v54 = vmul.f32 -1.442695, %v139_v53 }
 0x190   :  { %251 = vpow2.f32 %v241_v54 }
 0x196   :  { %v252_v55 = vpop.eup %251 }
 0x197   :  { %v145_v56 = vadd.f32 1.0, %v252_v55 }
 0x199   :  { %253 = vrcp.f32 %v145_v56  ;;  %v157_v60 = vand.u32 2147483648, %v145_v56  ;;  %v155_v62 = vand.u32 2147483647, %v145_v56  ;;  %vm151_vm6 = vweird.f32 %v145_v56 }
 0x19b   :  { %v158_v3 = vor.u32 1.1754944e-38, %v157_v60  ;;  %vm156_vm8 = vcmp.eq.f32.partialorder %v155_v62, 8.507059e+37 }
 0x19f   :  { %v254_v57 = vpop.eup %253 }
 0x1a0   :  { %v147_v58 = vmul.f32 %v254_v57, %v145_v56  ;;  %vm152_vm5 = vweird.f32 %v254_v57 }
 0x1a1   :  { %vm153_vm7 = vmor %vm151_vm6, %vm152_vm5 }
 0x1a2   :  { %v148_v59 = vsub.f32 1.0, %v147_v58 }
 0x1a4   :  { %v149_v61 = vmul.f32 %v254_v57, %v148_v59 }
 0x1a6   :  { %v150_v63 = vadd.f32 %v254_v57, %v149_v61 }
 0x1a8   :  { %v154_v8 = vsel %vm153_vm7, %v254_v57, %v150_v63 }
 0x1a9   :  { %v159_v10 = vsel %vm156_vm8, %v158_v3, %v154_v8 }
 0x1aa   :  { %v174_v13 = vperm.slane %v159_v10, 1  ;;  %v161_v15 = vperm.slane %v159_v10, 0 }
 0x1ac   :  { %185 = vperm.xlu1 %249, %v174_v13   ;;  %179 = vperm.xlu0 %248, %v174_v13  }
 0x1ad   :  { %166 = vperm.xlu2 %246, %v161_v15  }
 0x1b4   :  { %250 = vset.pattern.permute.xlu0 %v170_v52 }
 0x1b5   :  { %247 = vset.pattern.permute.xlu2 %v170_v52 }
 0x1bd   :  { %172 = vperm.xlu2 %247, %v161_v15  }
 0x207   :  { %v167_v18 = vpop.permute.xlu2 %166 }
 0x208   :  { %v187_v20 = vmul.f32 %v167_v18, %v345_v4  ;;  %v188_v21 = vmul.f32 %v167_v18, %v347_v5  ;;  %v189_v22 = vmul.f32 %v167_v18, %v351_v7  ;;  %v190_v24 = vmul.f32 %v167_v18, %v358_v11 }
 0x20a   :  { %203 = vst [vmem:[#allocation5] sm:$0xff] %v187_v20 }
 0x20b   :  { %204 = vst [vmem:[#allocation5 + $0x8] sm:$0xff] %v188_v21 }
 0x20c   :  { %205 = vst [vmem:[#allocation5 + $0x10] sm:$0xff] %v189_v22 }
 0x20d   :  { %206 = vst [vmem:[#allocation5 + $0x18] sm:$0xff] %v190_v24 }
 0x217   :  { %v173_v26 = vpop.permute.xlu2 %172 }
 0x218   :  { %v191_v27 = vmul.f32 %v173_v26, %v367_v16  ;;  %v192_v28 = vmul.f32 %v173_v26, %v369_v17  ;;  %v193_v29 = vmul.f32 %v173_v26, %v372_v19  ;;  %v194_v30 = vmul.f32 %v173_v26, %v381_v25 }
 0x21a   :  { %207 = vst [vmem:[#allocation5 + $0x20] sm:$0xff] %v191_v27 }
 0x21b   :  { %208 = vst [vmem:[#allocation5 + $0x28] sm:$0xff] %v192_v28 }
 0x21c   :  { %209 = vst [vmem:[#allocation5 + $0x30] sm:$0xff] %v193_v29 }
 0x21d   :  { %210 = vst [vmem:[#allocation5 + $0x38] sm:$0xff] %v194_v30 }
 0x21e   :  { %v186_v4 = vpop.permute.xlu1 %185  ;;  %v180_v5 = vpop.permute.xlu0 %179 }
 0x21f   :  { %v199_v7 = vmul.f32 %v186_v4, %v355_v9  ;;  %v200_v11 = vmul.f32 %v186_v4, %v360_v12  ;;  %v201_v31 = vmul.f32 %v186_v4, %v363_v14  ;;  %v202_v16 = vmul.f32 %v186_v4, %v378_v23 }
 0x220   :  { %v195_v17 = vmul.f32 %v180_v5, %v337_v0  ;;  %v196_v19 = vmul.f32 %v180_v5, %v339_v1  ;;  %v197_v25 = vmul.f32 %v180_v5, %v341_v2  ;;  %v198_v9 = vmul.f32 %v180_v5, %v349_v6 }
 0x221   :  { %215 = vst [vmem:[#allocation5 + $0x60] sm:$0xff] %v199_v7 }
 0x222   :  { %216 = vst [vmem:[#allocation5 + $0x68] sm:$0xff] %v200_v11 }
 0x223   :  { %217 = vst [vmem:[#allocation5 + $0x70] sm:$0xff] %v201_v31 }
 0x224   :  { %218 = vst [vmem:[#allocation5 + $0x78] sm:$0xff] %v202_v16 }
 0x225   :  { %211 = vst [vmem:[#allocation5 + $0x40] sm:$0xff] %v195_v17 }
 0x226   :  { %212 = vst [vmem:[#allocation5 + $0x48] sm:$0xff] %v196_v19 }
 0x227   :  { %213 = vst [vmem:[#allocation5 + $0x50] sm:$0xff] %v197_v25 }
 0x228   :  { %214 = vst [vmem:[#allocation5 + $0x58] sm:$0xff] %v198_v9 }
 0x229   :  { %231 = dma.vmem_to_hbm [thread:$0]  %s224_s23, 2048, %s226_s26, [#allocation4], %s308_s17, %s308_s17, %s309_s18  }
 0x22a   :  { %305 = dma.done.wait [#allocation4], 2048  }
 0x22b   :  { %306 = vsyncadd [#allocation4], 4294965248 }
 0x22c   :  { %236 = vsyncpa [#allocation3], 1 }
 0x22d   :  { %237 = vsyncpa [#allocation4], 1 }

</bundles_post_ra>
